<compile_context>
chip_gen: v6e
topology: v6e:2x2x1
jax: 0.10.0
libtpu: 0.0.40
codegen_flags: <defaults>
</compile_context>

<pallas_src>
import jax
import jax.numpy as jnp
from jax import lax
from jax.experimental import pallas as pl
from jax.experimental.pallas import tpu as pltpu


VMEM_LIMIT = 48 * 1024 * 1024  # explicit scoped-VMEM budget (safe on v5e/v6e/v7x)


# ----------------------------------------------------------------------------
# Attention "broadcast" core (obtain_descriptors):
#   f1 = cq @ W1 + b1 ; f2 = ckv @ W2 + b2
#   att = softmax_p( f1 @ f2^T )            (softmax over key/value pixels)
#   trans = att @ ckv
# cq / ckv are (TILE_P1, C) / (P2, C) channels-last pixel slabs in bf16.
# ----------------------------------------------------------------------------
def _attn_core(cq_ref, ckv_ref, w1_ref, b1_ref, w2_ref, b2_ref):
    cq = cq_ref[0, 0]                      # (T, C)  bf16
    ckv = ckv_ref[0, 0]                    # (P2, C) bf16
    f1 = (jnp.dot(cq, w1_ref[...], preferred_element_type=jnp.float32)
          + b1_ref[...]).astype(jnp.bfloat16)                       # (T, D)
    f2 = (jnp.dot(ckv, w2_ref[...], preferred_element_type=jnp.float32)
          + b2_ref[...]).astype(jnp.bfloat16)                       # (P2, D)
    # f1 @ f2^T without materializing a transpose (contract feature dims).
    att = lax.dot_general(f1, f2, (((1,), (1,)), ((), ())),
                          preferred_element_type=jnp.float32)       # (T, P2)
    # TODO(synk): for real P2 (>=1024) stream P2 tiles with an online softmax
    # instead of materializing the full (T, P2) attention matrix.
    att = att - jnp.max(att, axis=-1, keepdims=True)                # stable softmax
    p = jnp.exp(att)
    att = p * pl.reciprocal(jnp.sum(p, axis=-1, keepdims=True), approx=True)
    trans = jnp.dot(att.astype(jnp.bfloat16), ckv,
                    preferred_element_type=jnp.float32)             # (T, C) f32
    return cq, trans


def attn_project_kernel(cq_ref, ckv_ref, w1_ref, b1_ref, w2_ref, b2_ref,
                        wq_ref, wt_ref, out_ref):
    # concat(cq, trans) @ Wdec  ==  cq @ Wdec[:C] + trans @ Wdec[C:]
    cq, trans = _attn_core(cq_ref, ckv_ref, w1_ref, b1_ref, w2_ref, b2_ref)
    out = (jnp.dot(cq, wq_ref[...], preferred_element_type=jnp.float32)
           + jnp.dot(trans.astype(jnp.bfloat16), wt_ref[...],
                     preferred_element_type=jnp.float32))
    out_ref[0, 0] = out.astype(out_ref.dtype)


def attn_trans_kernel(cq_ref, ckv_ref, w1_ref, b1_ref, w2_ref, b2_ref, out_ref):
    _, trans = _attn_core(cq_ref, ckv_ref, w1_ref, b1_ref, w2_ref, b2_ref)
    out_ref[0, 0] = trans.astype(out_ref.dtype)


def attention_mix_project(cond, w1, b1, w2, b2, wdec, *, tile_p):
    """Both directions of obtain_descriptors (last level) + folded decoder proj.

    cond: (B, 2, P, C) bf16 stacked [image1-features, image2-features].
    Returns featsim: (B, 2, P, NF) bf16, [:,0] = featsim1, [:,1] = featsim2.
    """
    B, two, P, C = cond.shape
    assert two == 2 and P % tile_p == 0
    D = w1.shape[1]
    NF = wdec.shape[1]
    wq = wdec[:C]
    wt = wdec[C:]
    return pl.pallas_call(
        attn_project_kernel,
        out_shape=jax.ShapeDtypeStruct((B, 2, P, NF), jnp.bfloat16),
        grid=(B, 2, P // tile_p),
        in_specs=[
            pl.BlockSpec((1, 1, tile_p, C), lambda b, d, t: (b, d, t, 0)),      # query
            pl.BlockSpec((1, 1, P, C), lambda b, d, t: (b, 1 - d, 0, 0)),       # key/value
            pl.BlockSpec((C, D), lambda b, d, t: (0, 0)),
            pl.BlockSpec((1, D), lambda b, d, t: (0, 0)),
            pl.BlockSpec((C, D), lambda b, d, t: (0, 0)),
            pl.BlockSpec((1, D), lambda b, d, t: (0, 0)),
            pl.BlockSpec((C, NF), lambda b, d, t: (0, 0)),
            pl.BlockSpec((C, NF), lambda b, d, t: (0, 0)),
        ],
        out_specs=pl.BlockSpec((1, 1, tile_p, NF), lambda b, d, t: (b, d, t, 0)),
        compiler_params=pltpu.CompilerParams(
            dimension_semantics=("parallel", "parallel", "parallel"),
            vmem_limit_bytes=VMEM_LIMIT),
    )(cond, cond, w1, b1, w2, b2, wq, wt)


def attention_mix_trans(cond, w1, b1, w2, b2, *, tile_p):
    """Both directions of the second-to-last (S) level; emits only `trans`
    (B, 2, P, C).  The mixed descriptor is concat(cond[:, d], trans[:, d]);
    cond is already in HBM so no pass-through copy is made here."""
    B, two, P, C = cond.shape
    assert two == 2 and P % tile_p == 0
    D = w1.shape[1]
    return pl.pallas_call(
        attn_trans_kernel,
        out_shape=jax.ShapeDtypeStruct((B, 2, P, C), jnp.bfloat16),
        grid=(B, 2, P // tile_p),
        in_specs=[
            pl.BlockSpec((1, 1, tile_p, C), lambda b, d, t: (b, d, t, 0)),
            pl.BlockSpec((1, 1, P, C), lambda b, d, t: (b, 1 - d, 0, 0)),
            pl.BlockSpec((C, D), lambda b, d, t: (0, 0)),
            pl.BlockSpec((1, D), lambda b, d, t: (0, 0)),
            pl.BlockSpec((C, D), lambda b, d, t: (0, 0)),
            pl.BlockSpec((1, D), lambda b, d, t: (0, 0)),
        ],
        out_specs=pl.BlockSpec((1, 1, tile_p, C), lambda b, d, t: (b, d, t, 0)),
        compiler_params=pltpu.CompilerParams(
            dimension_semantics=("parallel", "parallel", "parallel"),
            vmem_limit_bytes=VMEM_LIMIT),
    )(cond, cond, w1, b1, w2, b2)


# ----------------------------------------------------------------------------
# Fused heads + hinge decision kernel:
#   conf/mask  = sigmoid(feat @ w_eff + b_eff)  (create_mlp(64,1,nl=3), eval-BN
#                chain folded into one weight + one bias per head)
#   dist       = || normalize(f1) - normalize(f2) ||^2   (NormBlock + hinge)
#   confPos    = conf1 * conf2
# Per-pixel reductions are done as ones-row matmuls so every result is a
# lane-dense (1, P) / (2, P) row; output is one (B, 8, P) slab:
#   rows = [conf1, mask1, conf2, mask2, dist, confPos, 0, 0]
# ----------------------------------------------------------------------------
def head_hinge_kernel(feat_ref, wh_ref, bh_ref, out_ref):
    f1 = feat_ref[0, 0]                                 # (P, NF) bf16
    f2 = feat_ref[0, 1]

    def dg(a, b):  # contract last dim of both -> (rows_a, rows_b)
        return lax.dot_general(a, b, (((1,), (1,)), ((), ())),
                               preferred_element_type=jnp.float32)

    h1 = jax.nn.sigmoid(dg(wh_ref[...], f1) + bh_ref[...])   # (2, P)
    h2 = jax.nn.sigmoid(dg(wh_ref[...], f2) + bh_ref[...])   # (2, P)

    f1f = f1.astype(jnp.float32)
    f2f = f2.astype(jnp.float32)
    ones = jnp.ones((1, f1f.shape[-1]), jnp.float32)
    ss1 = dg(ones, f1f * f1f)                                 # (1, P) sum f1^2
    ss2 = dg(ones, f2f * f2f)
    s12 = dg(ones, f1f * f2f)
    eps2 = 1e-24                                              # F.normalize eps=1e-12, clamp eps^2
    inv1 = lax.rsqrt(jnp.maximum(ss1, eps2))
    inv2 = lax.rsqrt(jnp.maximum(ss2, eps2))
    # ||n1 - n2||^2 = ||n1||^2 + ||n2||^2 - 2 n1.n2  with n = f * rsqrt(max(ss, eps^2))
    dist = ss1 * (inv1 * inv1) + ss2 * (inv2 * inv2) - 2.0 * s12 * (inv1 * inv2)
    conf_pos = h1[0:1, :] * h2[0:1, :]

    out_ref[0, 0:2, :] = h1
    out_ref[0, 2:4, :] = h2
    out_ref[0, 4:5, :] = dist
    out_ref[0, 5:6, :] = conf_pos
    out_ref[0, 6:8, :] = jnp.zeros_like(h1)


def head_hinge(feat, wh, bh):
    """feat: (B, 2, P, NF) bf16; wh: (2, NF) bf16 [conf, mask]; bh: (2, 1) f32."""
    B, two, P, NF = feat.shape
    assert two == 2
    return pl.pallas_call(
        head_hinge_kernel,
        out_shape=jax.ShapeDtypeStruct((B, 8, P), jnp.float32),
        grid=(B,),
        in_specs=[
            pl.BlockSpec((1, 2, P, NF), lambda b: (b, 0, 0, 0)),
            pl.BlockSpec((2, NF), lambda b: (0, 0)),
            pl.BlockSpec((2, 1), lambda b: (0, 0)),
        ],
        out_specs=pl.BlockSpec((1, 8, P), lambda b: (b, 0, 0)),
        compiler_params=pltpu.CompilerParams(
            dimension_semantics=("parallel",),
            vmem_limit_bytes=VMEM_LIMIT),
    )(feat, wh, bh)


# ----------------------------------------------------------------------------
# Deterministic parameter construction (synthetic; shapes follow __init__).
# create_mlp(64, 1, nl=3) in eval mode is a pure affine chain -> fold it:
#   y = (((x@w0)*s0 + t0)*w1)*s1 + t1)*w2)*s2 + t2  = x @ w_eff + b_eff
# ----------------------------------------------------------------------------
def make_head_params(key):
    ks = jax.random.split(key, 4)
    w0 = jax.random.normal(ks[0], (64,), jnp.float32) * 0.1
    w1 = jax.random.normal(ks[1], (), jnp.float32) * 0.5 + 1.0
    w2 = jax.random.normal(ks[2], (), jnp.float32) * 0.5 + 1.0
    eps = 1e-5
    bn = jax.random.normal(ks[3], (3, 4), jnp.float32) * 0.1
    gamma = 1.0 + bn[:, 0]
    beta = bn[:, 1]
    mean = bn[:, 2]
    var = 1.0 + jnp.abs(bn[:, 3])
    s = gamma / jnp.sqrt(var + eps)
    t = beta - mean * s
    w_eff = w0 * (s[0] * w1 * s[1] * w2 * s[2])
    b_eff = t[0] * w1 * s[1] * w2 * s[2] + t[1] * w2 * s[2] + t[2]
    return w_eff, b_eff


if __name__ == "__main__":
    key = jax.random.PRNGKey(0)
    ks = jax.random.split(key, 13)

    B = 2
    # Small stand-ins for the resnet50 encoder stages (real: CL=2048, CS=1024)
    CL, DL, HL, WL = 64, 128, 4, 4      # last encoder level, fp*L -> 128 (real 256)
    CS, DS, HS, WS = 32, 128, 8, 8      # second-to-last level, fp*S -> 128
    NF = 64                             # segmentation_head output channels
    PL, PS = HL * WL, HS * WS

    # TODO(synk): smp.Unet encoder not implemented — encoder features of the
    # two images are synthetic inputs, already stacked on a direction axis.
    condL = jax.random.normal(ks[0], (B, 2, PL, CL), jnp.float32).astype(jnp.bfloat16)
    condS = jax.random.normal(ks[1], (B, 2, PS, CS), jnp.float32).astype(jnp.bfloat16)

    # fp1L / fp2L / fp1S / fp2S 1x1-conv weights (C, D) bf16 + bias (1, D) f32
    fp1L_w = (jax.random.normal(ks[2], (CL, DL)) * 0.05).astype(jnp.bfloat16)
    fp1L_b = jax.random.normal(ks[3], (1, DL), jnp.float32) * 0.05
    fp2L_w = (jax.random.normal(ks[4], (CL, DL)) * 0.05).astype(jnp.bfloat16)
    fp2L_b = jax.random.normal(ks[5], (1, DL), jnp.float32) * 0.05
    fp1S_w = (jax.random.normal(ks[6], (CS, DS)) * 0.05).astype(jnp.bfloat16)
    fp1S_b = jax.random.normal(ks[7], (1, DS), jnp.float32) * 0.05
    fp2S_w = (jax.random.normal(ks[8], (CS, DS)) * 0.05).astype(jnp.bfloat16)
    fp2S_b = jax.random.normal(ks[9], (1, DS), jnp.float32) * 0.05

    # TODO(synk): smp Unet decoder + segmentation_head stand-in — a fixed 1x1
    # projection of concat(c1L, transL) to NF=64, folded into the kernel.
    dec_proj = (jax.random.normal(ks[10], (2 * CL, NF)) * 0.05).astype(jnp.bfloat16)

    # obtain_descriptors(cond1, cond2) and (cond2, cond1) in one call per level.
    featsim = attention_mix_project(condL, fp1L_w, fp1L_b, fp2L_w, fp2L_b,
                                    dec_proj, tile_p=PL)          # (B,2,PL,NF)
    transS = attention_mix_trans(condS, fp1S_w, fp1S_b, fp2S_w, fp2S_b,
                                 tile_p=32)                       # (B,2,PS,CS)

    # Fused regress_conf / binary_class heads + identity-sampled hinge decision.
    wc, tc = make_head_params(ks[11])       # regress_conf
    wm, tm = make_head_params(ks[12])       # binary_class
    Wh = jnp.stack([wc, wm], axis=0).astype(jnp.bfloat16)          # (2, 64)
    bh = jnp.stack([tc, tm]).reshape(2, 1).astype(jnp.float32)     # (2, 1)

    head_out = head_hinge(featsim, Wh, bh)                         # (B, 8, PL)
    confim1, maskim1 = head_out[:, 0], head_out[:, 1]
    confim2, maskim2 = head_out[:, 2], head_out[:, 3]
    trueMatch = head_out[:, 4]                                     # hinge distance
    confPos = head_out[:, 5]                                       # conf1 * conf2

    for t in (featsim, transS, head_out):
        jax.block_until_ready(t)

    assert featsim.shape == (B, 2, PL, NF)
    assert transS.shape == (B, 2, PS, CS)
    assert head_out.shape == (B, 8, PL)
    assert confim1.shape == (B, PL) and maskim2.shape == (B, PL)
    assert trueMatch.shape == (B, PL) and confPos.shape == (B, PL)
    print("KERNEL_OK")
</pallas_src>

<mosaic_0001>
module attributes {stable_mosaic.version = 11 : i64} {
  func.func @attn_project_kernel(%arg0: i32, %arg1: i32, %arg2: i32, %arg3: memref<1x1x16x64xbf16, #tpu.memory_space<vmem>>, %arg4: memref<1x1x16x64xbf16, #tpu.memory_space<vmem>>, %arg5: memref<64x128xbf16, #tpu.memory_space<vmem>>, %arg6: memref<1x128xf32, #tpu.memory_space<vmem>>, %arg7: memref<64x128xbf16, #tpu.memory_space<vmem>>, %arg8: memref<1x128xf32, #tpu.memory_space<vmem>>, %arg9: memref<64x64xbf16, #tpu.memory_space<vmem>>, %arg10: memref<64x64xbf16, #tpu.memory_space<vmem>>, %arg11: memref<1x1x16x64xbf16, #tpu.memory_space<vmem>>) attributes {dimension_semantics = [#tpu.dimension_semantics<parallel>, #tpu.dimension_semantics<parallel>, #tpu.dimension_semantics<parallel>], iteration_bounds = array<i64: 2, 2, 1>, scalar_prefetch = 0 : i64, scratch_operands = 0 : i64, tpu.core_type = #tpu.core_type<tc>, window_params = [{transform_indices = @transform_0, window_bounds = array<i64: 1, 1, 16, 64>}, {transform_indices = @transform_1, window_bounds = array<i64: 1, 1, 16, 64>}, {pipeline_mode = #tpu.pipeline_mode<synchronous>, transform_indices = @transform_2, window_bounds = array<i64: 64, 128>}, {pipeline_mode = #tpu.pipeline_mode<synchronous>, transform_indices = @transform_3, window_bounds = array<i64: 1, 128>}, {pipeline_mode = #tpu.pipeline_mode<synchronous>, transform_indices = @transform_4, window_bounds = array<i64: 64, 128>}, {pipeline_mode = #tpu.pipeline_mode<synchronous>, transform_indices = @transform_5, window_bounds = array<i64: 1, 128>}, {pipeline_mode = #tpu.pipeline_mode<synchronous>, transform_indices = @transform_6, window_bounds = array<i64: 64, 64>}, {pipeline_mode = #tpu.pipeline_mode<synchronous>, transform_indices = @transform_7, window_bounds = array<i64: 64, 64>}, {transform_indices = @transform_8, window_bounds = array<i64: 1, 1, 16, 64>}]} {
    %c0 = arith.constant 0 : index
    %c0_0 = arith.constant 0 : index
    %c0_1 = arith.constant 0 : index
    %c0_2 = arith.constant 0 : index
    %0 = vector.load %arg3[%c0, %c0_0, %c0_1, %c0_2] : memref<1x1x16x64xbf16, #tpu.memory_space<vmem>>, vector<1x1x16x64xbf16>
    %1 = vector.shape_cast %0 : vector<1x1x16x64xbf16> to vector<16x64xbf16>
    %c0_3 = arith.constant 0 : index
    %c0_4 = arith.constant 0 : index
    %c0_5 = arith.constant 0 : index
    %c0_6 = arith.constant 0 : index
    %2 = vector.load %arg4[%c0_3, %c0_4, %c0_5, %c0_6] : memref<1x1x16x64xbf16, #tpu.memory_space<vmem>>, vector<1x1x16x64xbf16>
    %3 = vector.shape_cast %2 : vector<1x1x16x64xbf16> to vector<16x64xbf16>
    %c0_7 = arith.constant 0 : index
    %c0_8 = arith.constant 0 : index
    %4 = vector.load %arg5[%c0_7, %c0_8] : memref<64x128xbf16, #tpu.memory_space<vmem>>, vector<64x128xbf16>
    %cst = arith.constant dense<0.000000e+00> : vector<16x128xf32>
    %5 = tpu.matmul %1, %4, %cst {dimension_numbers = #tpu.dot_dimension_numbers<[1], [0], [0], [1], [0, 0, 1, 1], [], []>} : vector<16x64xbf16>, vector<64x128xbf16>, vector<16x128xf32> -> vector<16x128xf32>
    %c0_9 = arith.constant 0 : index
    %c0_10 = arith.constant 0 : index
    %6 = vector.load %arg6[%c0_9, %c0_10] : memref<1x128xf32, #tpu.memory_space<vmem>>, vector<1x128xf32>
    %7 = vector.broadcast %6 : vector<1x128xf32> to vector<16x128xf32>
    %8 = arith.addf %5, %7 : vector<16x128xf32>
    %9 = arith.truncf %8 : vector<16x128xf32> to vector<16x128xbf16>
    %c0_11 = arith.constant 0 : index
    %c0_12 = arith.constant 0 : index
    %10 = vector.load %arg7[%c0_11, %c0_12] : memref<64x128xbf16, #tpu.memory_space<vmem>>, vector<64x128xbf16>
    %cst_13 = arith.constant dense<0.000000e+00> : vector<16x128xf32>
    %11 = tpu.matmul %3, %10, %cst_13 {dimension_numbers = #tpu.dot_dimension_numbers<[1], [0], [0], [1], [0, 0, 1, 1], [], []>} : vector<16x64xbf16>, vector<64x128xbf16>, vector<16x128xf32> -> vector<16x128xf32>
    %c0_14 = arith.constant 0 : index
    %c0_15 = arith.constant 0 : index
    %12 = vector.load %arg8[%c0_14, %c0_15] : memref<1x128xf32, #tpu.memory_space<vmem>>, vector<1x128xf32>
    %13 = vector.broadcast %12 : vector<1x128xf32> to vector<16x128xf32>
    %14 = arith.addf %11, %13 : vector<16x128xf32>
    %15 = arith.truncf %14 : vector<16x128xf32> to vector<16x128xbf16>
    %cst_16 = arith.constant dense<0.000000e+00> : vector<16x16xf32>
    %16 = tpu.matmul %9, %15, %cst_16 {dimension_numbers = #tpu.dot_dimension_numbers<[1], [1], [0], [0], [0, 0, 1, 0], [], []>} : vector<16x128xbf16>, vector<16x128xbf16>, vector<16x16xf32> -> vector<16x16xf32>
    %cst_17 = arith.constant dense<0xFF800000> : vector<16xf32>
    %17 = vector.multi_reduction <maximumf>, %16, %cst_17 [1] : vector<16x16xf32> to vector<16xf32>
    %18 = vector.shape_cast %17 : vector<16xf32> to vector<16x1xf32>
    %19 = vector.broadcast %18 : vector<16x1xf32> to vector<16x16xf32>
    %20 = arith.subf %16, %19 : vector<16x16xf32>
    %21 = math.exp %20 : vector<16x16xf32>
    %cst_18 = arith.constant dense<0.000000e+00> : vector<16xf32>
    %22 = vector.multi_reduction <add>, %21, %cst_18 [1] : vector<16x16xf32> to vector<16xf32>
    %23 = vector.shape_cast %22 : vector<16xf32> to vector<16x1xf32>
    %24 = tpu.reciprocal %23 {approx = true} : vector<16x1xf32> -> vector<16x1xf32>
    %25 = vector.broadcast %24 : vector<16x1xf32> to vector<16x16xf32>
    %26 = arith.mulf %21, %25 : vector<16x16xf32>
    %27 = arith.truncf %26 : vector<16x16xf32> to vector<16x16xbf16>
    %cst_19 = arith.constant dense<0.000000e+00> : vector<16x64xf32>
    %28 = tpu.matmul %27, %3, %cst_19 {dimension_numbers = #tpu.dot_dimension_numbers<[1], [0], [0], [1], [0, 0, 1, 1], [], []>} : vector<16x16xbf16>, vector<16x64xbf16>, vector<16x64xf32> -> vector<16x64xf32>
    %c0_20 = arith.constant 0 : index
    %c0_21 = arith.constant 0 : index
    %29 = vector.load %arg9[%c0_20, %c0_21] : memref<64x64xbf16, #tpu.memory_space<vmem>>, vector<64x64xbf16>
    %cst_22 = arith.constant dense<0.000000e+00> : vector<16x64xf32>
    %30 = tpu.matmul %1, %29, %cst_22 {dimension_numbers = #tpu.dot_dimension_numbers<[1], [0], [0], [1], [0, 0, 1, 1], [], []>} : vector<16x64xbf16>, vector<64x64xbf16>, vector<16x64xf32> -> vector<16x64xf32>
    %31 = arith.truncf %28 : vector<16x64xf32> to vector<16x64xbf16>
    %c0_23 = arith.constant 0 : index
    %c0_24 = arith.constant 0 : index
    %32 = vector.load %arg10[%c0_23, %c0_24] : memref<64x64xbf16, #tpu.memory_space<vmem>>, vector<64x64xbf16>
    %cst_25 = arith.constant dense<0.000000e+00> : vector<16x64xf32>
    %33 = tpu.matmul %31, %32, %cst_25 {dimension_numbers = #tpu.dot_dimension_numbers<[1], [0], [0], [1], [0, 0, 1, 1], [], []>} : vector<16x64xbf16>, vector<64x64xbf16>, vector<16x64xf32> -> vector<16x64xf32>
    %34 = arith.addf %30, %33 : vector<16x64xf32>
    %35 = arith.truncf %34 : vector<16x64xf32> to vector<16x64xbf16>
    %c0_26 = arith.constant 0 : index
    %c0_27 = arith.constant 0 : index
    %c0_28 = arith.constant 0 : index
    %c0_29 = arith.constant 0 : index
    %36 = vector.load %arg11[%c0_26, %c0_27, %c0_28, %c0_29] : memref<1x1x16x64xbf16, #tpu.memory_space<vmem>>, vector<1x1x16x64xbf16>
    %37 = vector.shape_cast %36 : vector<1x1x16x64xbf16> to vector<16x64xbf16>
    %38 = vector.shape_cast %35 : vector<16x64xbf16> to vector<1x1x16x64xbf16>
    tpu.vector_store %arg11[%c0_26, %c0_27, %c0_28, %c0_29], %38 {strides = array<i32>} : memref<1x1x16x64xbf16, #tpu.memory_space<vmem>>, vector<1x1x16x64xbf16>,
    return
  }
  func.func @transform_0(%arg0: i32, %arg1: i32, %arg2: i32) -> (i32, i32, i32, i32) {
    %c0_i32 = arith.constant 0 : i32
    %c0_i32_0 = arith.constant 0 : i32
    return %arg0, %arg1, %arg2, %c0_i32 : i32, i32, i32, i32
  }
  func.func @transform_1(%arg0: i32, %arg1: i32, %arg2: i32) -> (i32, i32, i32, i32) {
    %c1_i32 = arith.constant 1 : i32
    %0 = arith.subi %c1_i32, %arg1 : i32
    %c0_i32 = arith.constant 0 : i32
    %c0_i32_0 = arith.constant 0 : i32
    %c0_i32_1 = arith.constant 0 : i32
    return %arg0, %0, %c0_i32, %c0_i32_0 : i32, i32, i32, i32
  }
  func.func @transform_2(%arg0: i32, %arg1: i32, %arg2: i32) -> (i32, i32) {
    %c0_i32 = arith.constant 0 : i32
    %c0_i32_0 = arith.constant 0 : i32
    %c0_i32_1 = arith.constant 0 : i32
    return %c0_i32, %c0_i32_0 : i32, i32
  }
  func.func @transform_3(%arg0: i32, %arg1: i32, %arg2: i32) -> (i32, i32) {
    %c0_i32 = arith.constant 0 : i32
    %c0_i32_0 = arith.constant 0 : i32
    %c0_i32_1 = arith.constant 0 : i32
    return %c0_i32, %c0_i32_0 : i32, i32
  }
  func.func @transform_4(%arg0: i32, %arg1: i32, %arg2: i32) -> (i32, i32) {
    %c0_i32 = arith.constant 0 : i32
    %c0_i32_0 = arith.constant 0 : i32
    %c0_i32_1 = arith.constant 0 : i32
    return %c0_i32, %c0_i32_0 : i32, i32
  }
  func.func @transform_5(%arg0: i32, %arg1: i32, %arg2: i32) -> (i32, i32) {
    %c0_i32 = arith.constant 0 : i32
    %c0_i32_0 = arith.constant 0 : i32
    %c0_i32_1 = arith.constant 0 : i32
    return %c0_i32, %c0_i32_0 : i32, i32
  }
  func.func @transform_6(%arg0: i32, %arg1: i32, %arg2: i32) -> (i32, i32) {
    %c0_i32 = arith.constant 0 : i32
    %c0_i32_0 = arith.constant 0 : i32
    %c0_i32_1 = arith.constant 0 : i32
    return %c0_i32, %c0_i32_0 : i32, i32
  }
  func.func @transform_7(%arg0: i32, %arg1: i32, %arg2: i32) -> (i32, i32) {
    %c0_i32 = arith.constant 0 : i32
    %c0_i32_0 = arith.constant 0 : i32
    %c0_i32_1 = arith.constant 0 : i32
    return %c0_i32, %c0_i32_0 : i32, i32
  }
  func.func @transform_8(%arg0: i32, %arg1: i32, %arg2: i32) -> (i32, i32, i32, i32) {
    %c0_i32 = arith.constant 0 : i32
    %c0_i32_0 = arith.constant 0 : i32
    return %arg0, %arg1, %arg2, %c0_i32 : i32, i32, i32, i32
  }
}

</mosaic_0001>

<bundles_post_ra>
// kernel: tpu_custom_call.1
= control target key start
LH: loop header
LB: loop body
LE: loop exit
PB: predicated region body
PF: predicated region fallthrough
CT: control target
= control target key end

     0   :  { %s2171_s0 = inlined_call_operand.hbm [shape: bf16[2,2,16,64], index: 0, kind: input, shape index: {}]   ;;  %s2172_s1 = inlined_call_operand.hbm [shape: bf16[2,2,16,64], index: 1, kind: input, shape index: {}]   ;;  %s2173_s2 = inlined_call_operand.hbm [shape: bf16[64,128], index: 2, kind: input, shape index: {}]   ;;  %s2174_s3 = inlined_call_operand.vmem [shape: f32[1,128], index: 3, kind: input, shape index: {}]   ;;  %s2175_s4 = inlined_call_operand.hbm [shape: bf16[64,128], index: 4, kind: input, shape index: {}]   ;;  %s2176_s5 = inlined_call_operand.vmem [shape: f32[1,128], index: 5, kind: input, shape index: {}]   ;;  %s2177_s6 = inlined_call_operand.hbm [shape: bf16[64,64], index: 6, kind: input, shape index: {}]   ;;  %s2178_s7 = inlined_call_operand.hbm [shape: bf16[64,64], index: 7, kind: input, shape index: {}]   ;;  %s2179_s8 = inlined_call_operand.hbm [shape: bf16[2,2,16,64], index: 8, kind: output, shape index: {}]  }
   0x1   :  { %2196 = sst [smem:[#allocation30_spill]] %s2173_s2 }
   0x2   :  { %2197 = sst [smem:[#allocation31_spill]] %s2175_s4 }
   0x3   :  { %2198 = sst [smem:[#allocation32_spill]] %s2177_s6 }
   0x4   :  { %2199 = sst [smem:[#allocation33_spill]] %s2178_s7 }
   0x5   :  { %2200 = sst [smem:[#allocation34_spill]] %s2179_s8 }
   0x6   :  { %13 = vsyncpa [#allocation3], 0 }
   0x7   :  { %15 = vsyncpa [#allocation3 + $0x1], 0 }
   0x8   :  { %16 = vsyncpa [#allocation6], 0 }
   0x9   :  { %18 = vsyncpa [#allocation6 + $0x1], 0 }
   0xa   :  { %19 = vsyncpa [#allocation9], 0 }
   0xb   :  { %20 = vsyncpa [#allocation12], 0 }
   0xc   :  { %21 = vsyncpa [#allocation4], 0 }
   0xd   :  { %23 = vsyncpa [#allocation4 + $0x1], 0  ;;  %s1776_s27 = smov 0   ;;  %s1778_s28 = smov 0  }
   0xe   :  { %s1780_s29 = smov 0   ;;  %s1782_s30 = smov 0  }
   0xf   :  { %s1784_s9 = smov 0   ;;  %s1786_s10 = smov 0  }
  0x10   :  { %s1788_s11 = smov 0   ;;  %s1790_s12 = smov 0  }
  0x11   :  { %s1792_s13 = smov 0   ;;  %s1794_s14 = smov 0  }
  0x12   :  { %s1796_s15 = smov 0  }
  0x13 LB: > { %2201 = sst [smem:[#allocation20_spill]] %s1688_s30  ;;  %s1830_s16 = sadd.s32 4294967295, %s1716_s15   ;;  %s1716_s15 = sphi %s1796_s15, %s29_s15   ;;  %s1712_s14 = sphi %s1794_s14, %s2253_s14   ;;  %s1708_s13 = sphi %s1792_s13, %s2245_s13   ;;  %s1704_s12 = sphi %s1790_s12, %s2252_s12   ;;  %s1700_s11 = sphi %s1788_s11, %s2244_s11   ;;  %s1696_s10 = sphi %s1786_s10, %s2243_s10   ;;  %s1692_s9 = sphi %s1784_s9, %s2251_s9   ;;  %s1688_s30 = sphi %s1782_s30, %s2250_s30   ;;  %s1684_s29 = sphi %s1780_s29, %s2249_s29   ;;  %s1680_s28 = sphi %s1778_s28, %s2248_s28   ;;  %s1676_s27 = sphi %s1776_s27, %s2247_s27  }
  0x14   : > { %2202 = sst [smem:[#allocation21_spill]] %s1696_s10  ;;  %p102_p0 = scmp.ne.s32.totalorder %s1680_s28, %s1676_s27 }
  0x15   : > { %2203 = sst [smem:[#allocation22_spill]] %s1700_s11  ;;  %p2186_p1 = scmp.eq.s32.totalorder %s1830_s16, 0 }
  0x16   : > { %2204 = sst [smem:[#allocation23_spill]] %s1704_s12  ;;  %p256_p2 = scmp.eq.s32.totalorder %s1830_s16, 3 }
  0x17   : > { %2205 = sst [smem:[#allocation24_spill]] %s1708_s13  ;;  %p1099_p3 = scmp.ge.s32.totalorder %s1716_s15, 1 }
  0x18   : > { %p269_p4 = scmp.lt.s32.totalorder %s1716_s15, 5  ;;  %p1839_p5 = por %p102_p0, %p2186_p1 }
  0x19   : > { %s1718_s19 = smov [#allocation7]   ;;  %s1719_s22 = smov [#allocation8]  }
  0x1a   : > { %p1843_p6 = pnand %p1099_p3, %p269_p4  ;;  %s281_s20 = sshll.u32 %s1718_s19, 4  ;;  %s282_s20 = int_to_ptr.vmem [resolvable:$true] %s281_s20 }
  0x1b   : > { %s297_s23 = sshll.u32 %s1719_s22, 4  ;;  %s1431_s24 = scalar_lea.vmem %s282_s20, 512  ;;  %s298_s23 = int_to_ptr.vmem [resolvable:$true] %s297_s23 }
  0x1c   : > { %p1262_p7 = pneg %p1843_p6  ;;  %p1432_p10 = scmp.ne.s32.totalorder %s282_s20, %s1431_s24 }
  0x1d   : > { %p1439_p13 = scmp.lt.s32.totalorder %s282_s20, %s282_s20  ;;  %p1440_p0 = scmp.lt.s32.totalorder %s1431_s24, %s1431_s24 }
  0x1e   : > { %p1851_p8 = pnand %p1262_p7, %p2186_p1 }
  0x1f   : > { %p1441_p3 = por %p1440_p0, %p1439_p13 }
  0x20   : > { %p1422_p9 = pneg %p1851_p8 }
  0x22   : > { %p1434_p11 = pnand %p1432_p10, %p1422_p9 }
  0x24   : > { %p1435_p12 = pneg %p1434_p11 }
  0x26   : > { %p1442_p4 = pnand %p1441_p3, %p1435_p12 }
  0x28   : > { %1445 = shalt.err (!%p1442_p4)
}
  0x29   : > { %s2181_s25 = smov 64   ;;  %s2183_s26 = smov 4  }
  0x2a   : > { %s2209_s2 = sld [smem:[#allocation30_spill]]  ;;  %s1457_s22 = scalar_lea.vmem %s298_s23, 512 }
  0x2b   : > { %p1458_p7 = scmp.ne.s32.totalorder %s298_s23, %s1457_s22  ;;  %p1465_p12 = scmp.lt.s32.totalorder %s298_s23, %s298_s23 }
  0x2c   : > { %p1466_p13 = scmp.lt.s32.totalorder %s1457_s22, %s1457_s22 }
  0x2d   : > { %p1460_p10 = pnand %p1458_p7, %p1422_p9 }
  0x2e   : > { %p1467_p0 = por %p1466_p13, %p1465_p12 }
  0x2f   : > { %p1461_p11 = pneg %p1460_p10 }
  0x30   : > { %1265 = dma.hbm_to_vmem [thread:$0]  (!%p1851_p8), %s2209_s2, 512, %s282_s20, [#allocation6], %s2181_s25, %s2181_s25, %s2183_s26  }
  0x31   : > { %p1468_p3 = pnand %p1467_p0, %p1461_p11 }
  0x33   : > { %1471 = shalt.err (!%p1468_p3)
}
  0x34   : > { %s2210_s4 = sld [smem:[#allocation31_spill]]  ;;  %s1722_s20 = smov [#allocation10]  }
  0x35   : > { %s313_s27 = sshll.u32 %s1722_s20, 4  ;;  %s1723_s19 = smov [#allocation11]   ;;  %s314_s27 = int_to_ptr.vmem [resolvable:$true] %s313_s27 }
  0x36   : > { %s326_s2 = sshll.u32 %s1723_s19, 4  ;;  %s1483_s12 = scalar_lea.vmem %s314_s27, 512  ;;  %s327_s2 = int_to_ptr.vmem [resolvable:$true] %s326_s2 }
  0x37   : > { %p1484_p4 = scmp.ne.s32.totalorder %s314_s27, %s1483_s12  ;;  %p1491_p11 = scmp.lt.s32.totalorder %s314_s27, %s314_s27 }
  0x38   : > { %p1492_p12 = scmp.lt.s32.totalorder %s1483_s12, %s1483_s12 }
  0x39   : > { %p1486_p7 = pnand %p1484_p4, %p1422_p9 }
  0x3a   : > { %1268 = dma.hbm_to_vmem [thread:$0]  (!%p1851_p8), %s2210_s4, 512, %s298_s23, [#allocation9], %s2181_s25, %s2181_s25, %s2183_s26  }
  0x3b   : > { %p1487_p10 = pneg %p1486_p7  ;;  %p1493_p13 = por %p1492_p12, %p1491_p11 }
  0x3d   : > { %p1494_p0 = pnand %p1493_p13, %p1487_p10 }
  0x3f   : > { %1497 = shalt.err (!%p1494_p0)
}
  0x40   : > { %s2211_s6 = sld [smem:[#allocation32_spill]]  ;;  %s1509_s22 = scalar_lea.vmem %s327_s2, 512 }
  0x41   : > { %p1510_p3 = scmp.ne.s32.totalorder %s327_s2, %s1509_s22  ;;  %p1517_p11 = scmp.lt.s32.totalorder %s327_s2, %s327_s2 }
  0x42   : > { %p1518_p10 = scmp.lt.s32.totalorder %s1509_s22, %s1509_s22 }
  0x43   : > { %p1512_p4 = pnand %p1510_p3, %p1422_p9 }
  0x44   : > { %p1519_p12 = por %p1518_p10, %p1517_p11 }
  0x45   : > { %p1513_p7 = pneg %p1512_p4 }
  0x46   : > { %1271 = dma.hbm_to_vmem [thread:$0]  (!%p1851_p8), %s2211_s6, 512, %s314_s27, [#allocation9], %s2181_s25, %s2181_s25, %s2183_s26  }
  0x47   : > { %p1520_p13 = pnand %p1519_p12, %p1513_p7 }
  0x49   : > { %1523 = shalt.err (!%p1520_p13)
}
  0x4a   : > { %s2212_s7 = sld [smem:[#allocation33_spill]]  ;;  %s1098_s21 = sadd.s32 4294967294, %s1716_s15  }
  0x4b   : > { %s44_s20 = sadd.s32 1, %s1708_s13  ;;  %s48_s27 = sadd.s32 1, %s1712_s14 }
  0x4c   : > { %p46_p9 = scmp.ge.s32.totalorder %s44_s20, 2  ;;  %s59_s19 = sadd.s32 1, %s1696_s10 }
  0x4d   : > { %p66_p0 = scmp.ne.s32.totalorder %s1696_s10, %s1692_s9  ;;  %p2195_p3 = scmp.eq.s32.totalorder %s1716_s15, 0 }
  0x4e   : > { %s2255_s20 = smov (%p46_p9, %s44_s20), 0  ;;  %s2257_s27 = smov (!%p46_p9, %s48_s27), %s1712_s14 }
  0x4f   : > { %2213 = sst [smem:[#allocation25_spill]] %s2255_s20  ;;  %p50_p4 = scmp.ge.s32.totalorder %s2257_s27, 2 }
  0x50   : > { %1274 = dma.hbm_to_vmem [thread:$0]  (!%p1851_p8), %s2212_s7, 512, %s327_s2, [#allocation12], %s2181_s25, %s2181_s25, %s2183_s26  }
  0x51   : > { %s53_s2 = ssub.s32 %s1708_s13, %s2255_s20  ;;  %p1918_p8 = por %p2195_p3, %p66_p0 }
  0x52   : > { %p72_p7 = scmp.ne.s32.totalorder %s1692_s9, %s1688_s30  ;;  %s82_s23 = ssub.s32 1, %s1708_s13 }
  0x53   : > { %s83_s22 = ssub.s32 1, %s2255_s20  ;;  %s2259_s27 = smov (%p50_p4, %s2257_s27), 0 }
  0x54   : > { %2215 = sst [smem:[#allocation26_spill]] %s2259_s27  ;;  %p1933_p11 = por %p2186_p1, %p72_p7 }
  0x55   : > { %s85_s24 = ssub.s32 %s82_s23, %s83_s22  ;;  %s52_s25 = ssub.s32 %s1712_s14, %s2259_s27 }
  0x56   : > { %p1944_p10 = por %p256_p2, %p66_p0  ;;  %s54_s4 = sor.u32 %s53_s2, %s52_s25 }
  0x57   : > { %s86_s6 = sor.u32 %s85_s24, %s52_s25  ;;  %p57_p12 = scmp.eq.s32.totalorder %s54_s4, 0 }
  0x58   : > { %s2217_s26 = scalar_select %p1944_p10, 1, 0 }
  0x59   : > { %p1948_p13 = scmp.eq.s32.totalorder %s86_s6, 0  ;;  %p262_p9 = scmp.eq.s32.totalorder %s1098_s21, 3 }
  0x5a   : > { %2218 = sst [smem:[#allocation27_spill]] %s2217_s26  ;;  %p2194_p4 = scmp.lt.s32.totalorder %s1716_s15, 4 }
  0x5b   : > { %s1954_s20 = scalar_select %p57_p12, %s1696_s10, %s59_s19  }
  0x5c   : > { %p1959_p1 = por %p262_p9, %p72_p7  ;;  %s340_s27 = sand.u32 1, %s1696_s10  }
  0x5d   : > { %2220 = sst [smem:[#allocation28_spill]] %s1954_s20  ;;  %s1105_s26 = sshll.u32 %s340_s27, 3 }
  0x5e   : > { %s2221_s22 = scalar_select %p1959_p1, 1, 0 }
  0x5f   : > { %s1106_s2 = sshll.u32 %s1708_s13, 1  ;;  %s1107_s25 = sshll.u32 %s1712_s14, 2 }
  0x60   : > { %2222 = sst [smem:[#allocation29_spill]] %s2221_s22  ;;  %s344_s24 = scalar_lea.vmem [#allocation2], %s1105_s26 }
  0x61   : > { %s355_s11 = sshll.u32 %s344_s24, 4  ;;  %s352_s4 = sadd.s32 %s1107_s25, %s1106_s2  ;;  %s356_s11 = int_to_ptr.vmem [resolvable:$true] %s355_s11 }
  0x62   : > { %s1108_s6 = sshll.u32 %s352_s4, 6  ;;  %p1970_p2 = pnand %p2194_p4, %p1918_p8 }
  0x63   : > { %s354_s22 = scalar_lea.hbm %s2171_s0, %s1108_s6  ;;  %s1110_s10 = sshll.u32 %s82_s23, 1 }
  0x64   : > { %s376_s30 = sadd.s32 %s1110_s10, %s1107_s25  ;;  %s341_s13 = scalar_lea.sflag [#allocation3], %s340_s27 }
  0x65   : > { %p1526_p0 = pneg %p1970_p2  ;;  %s1537_s26 = scalar_lea.vmem %s356_s11, 128 }
  0x66   : > { %p1538_p7 = scmp.ne.s32.totalorder %s356_s11, %s1537_s26  ;;  %s1724_s8 = smov [#allocation2]  }
  0x67   : > { %s1542_s2 = sshll.u32 %s1724_s8, 4  ;;  %s1543_s2 = int_to_ptr.vmem [resolvable:$false] %s1542_s2 }
  0x68   : > { %p1540_p12 = pnand %p1538_p7, %p1526_p0  ;;  %s1544_s24 = scalar_lea.vmem %s1543_s2, 256 }
  0x69   : > { %p1545_p8 = scmp.lt.s32.totalorder %s356_s11, %s1543_s2  ;;  %p1546_p4 = scmp.lt.s32.totalorder %s1544_s24, %s1537_s26 }
  0x6a   : > { %p1541_p9 = pneg %p1540_p12 }
  0x6b   : > { %p1547_p3 = por %p1546_p4, %p1545_p8 }
  0x6d   : > { %p1548_p1 = pnand %p1547_p3, %p1541_p9 }
  0x6f   : > { %1551 = shalt.err (!%p1548_p1)
}
  0x70   : > { %s2224_s20 = smov 4   ;;  %s2225_s10 = smov 64  }
  0x71   : > { %1278 = dma.hbm_to_vmem [thread:$0]  (!%p1970_p2), %s354_s22, 128, %s356_s11, %s341_s13, %s2225_s10, %s2225_s10, %s2224_s20  }
  0x72   : > { %s1112_s27 = sshll.u32 %s376_s30, 6  ;;  %s89_s23 = sadd.s32 1, %s1684_s29 }
  0x73   : > { %p96_p4 = scmp.ne.s32.totalorder %s1684_s29, %s1680_s28  ;;  %p2226_p1 = scmp.eq.s32.totalorder %s1716_s15, 0 }
  0x74   : > { %s1990_s25 = scalar_select %p1948_p13, %s1684_s29, %s89_s23  }
  0x75   : > { %p98_p3 = por %p96_p4, %p2226_p1  ;;  %s365_s4 = sand.u32 1, %s1716_s15  }
  0x76   : > { %s378_s19 = scalar_lea.hbm %s2172_s1, %s1112_s27  ;;  %s367_s26 = sand.u32 1, %s1684_s29  }
  0x77   : > { %s1109_s8 = sshll.u32 %s367_s26, 3  ;;  %p2227_p0 = scmp.lt.s32.totalorder %s1716_s15, 4 }
  0x78   : > { %s369_s30 = scalar_lea.vmem [#allocation5], %s1109_s8  ;;  %s366_s7 = scalar_lea.sflag [#allocation6], %s365_s4 }
  0x79   : > { %p2001_p7 = pnand %p2227_p0, %p98_p3  ;;  %s379_s11 = sshll.u32 %s369_s30, 4  ;;  %s380_s11 = int_to_ptr.vmem [resolvable:$true] %s379_s11 }
  0x7a   : > { %s1565_s13 = scalar_lea.vmem %s380_s11, 128  ;;  %s1725_s22 = smov [#allocation5]  }
  0x7b   : > { %p1554_p13 = pneg %p2001_p7  ;;  %p1566_p2 = scmp.ne.s32.totalorder %s380_s11, %s1565_s13 }
  0x7c   : > { %s1570_s24 = sshll.u32 %s1725_s22, 4  ;;  %s1571_s24 = int_to_ptr.vmem [resolvable:$false] %s1570_s24 }
  0x7d   : > { %p1568_p12 = pnand %p1566_p2, %p1554_p13  ;;  %s1572_s27 = scalar_lea.vmem %s1571_s24, 256 }
  0x7e   : > { %p1573_p8 = scmp.lt.s32.totalorder %s380_s11, %s1571_s24  ;;  %p1574_p4 = scmp.lt.s32.totalorder %s1572_s27, %s1565_s13 }
  0x7f   : > { %p1569_p9 = pneg %p1568_p12 }
  0x80   : > { %p1575_p1 = por %p1574_p4, %p1573_p8 }
  0x82   : > { %p1576_p3 = pnand %p1575_p1, %p1569_p9 }
  0x84   : > { %1579 = shalt.err (!%p1576_p3)
}
  0x85   : > { %1281 = dma.hbm_to_vmem [thread:$0]  (!%p2001_p7), %s378_s19, 128, %s380_s11, %s366_s7, %s2225_s10, %s2225_s10, %s2224_s20  }
  0x86   : > { %391 = sbr.rel (%p1843_p6) target bundleno = 1304 (0x518), region = 52  ;;  %s2015_s23 = sand.u32 (!%p1843_p6), 1, %s1692_s9  }
  0x87   : > { %s1114_s4 = sshll.u32 (!%p1843_p6), %s2015_s23, 3  ;;  %s394_s6 = scalar_lea.sflag (!%p1843_p6), [#allocation3], %s2015_s23 }
  0x88   : > { %s2021_s21 = scalar_lea.vmem (!%p1843_p6), [#allocation2], %s1114_s4 }
  0x8b   : > { %1651 = dma.done.wait (%p1933_p11), %s394_s6, 128  }
  0x8c   : > { %1653 = vsyncadd (%p1933_p11), %s394_s6, 4294967168  ;;  %s402_s18 = sand.u32 1, %s1830_s16   ;;  %s404_s20 = sand.u32 1, %s1680_s28  }
  0x8d   : > { %s2029_s10 = sshll.u32 %s404_s20, 3  ;;  %s403_s19 = scalar_lea.sflag [#allocation6], %s402_s18 }
  0x8e   : > { %s406_s26 = scalar_lea.vmem [#allocation5], %s2029_s10 }
  0x8f   : > { %1655 = dma.done.wait (%p1839_p5), %s403_s19, 128  }
  0x90   : > { %1657 = vsyncadd (%p1839_p5), %s403_s19, 4294967168  ;;  %p2229_p6 = scmp.eq.s32.totalorder %s1830_s16, 0 }
  0x92   : > { %1659 = dma.done.wait (%p2229_p6), [#allocation6], 512   ;;  %p2230_p11 = pmov %p2229_p6 }
  0x93   : > { %p2231_p0 = pmov %p2229_p6 }
  0x94   : > { %1661 = vsyncadd (%p2230_p11), [#allocation6], 4294966784 }
  0x95   : > { %1663 = dma.done.wait (%p2231_p0), [#allocation9], 1024   ;;  %p2232_p7 = pmov %p2231_p0 }
  0x96   : > { %p2233_p13 = pmov %p2231_p0 }
  0x97   : > { %1665 = vsyncadd (%p2232_p7), [#allocation9], 4294966272 }
  0x98   : > { %1667 = dma.done.wait (%p2233_p13), [#allocation12], 512   ;;  %p2234_p2 = pmov %p2231_p0 }
  0x99   : > { %v1726_v0 = vmov 0.0   ;;  %vm1727_vm0 = vmmov 0   ;;  %v1394_v1 = vld [vmem:[#allocation8 + $0x18] sm:$0xff]   ;;  %v1396_v3 = vld [vmem:[#allocation8 + $0x10] sm:$0xff]   ;;  %v1398_v5 = vld [vmem:[#allocation8 + $0x8] sm:$0xff]   ;;  %vm512_vm1 = vcmask 523264  }
  0x9a   : > { %1669 = vsyncadd (%p2234_p2), [#allocation12], 4294966784  ;;  %1192 = vmatprep.subr.bf16.mxu1 %v1726_v0  ;;  %1180 = vmatprep.subr.bf16.mxu0 %v1726_v0  ;;  %v1395_v2 = vld [vmem:[#allocation7 + $0x18] sm:$0xff]   ;;  %v1397_v4 = vld [vmem:[#allocation7 + $0x10] sm:$0xff]   ;;  %vm688_vm2 = vcmask 130048   ;;  %s2235_s2 = sld [smem:[#allocation22_spill]] }
  0x9b   : > { %1200 = vmatprep.mubr.msk.bf16.mxu1 %vm1727_vm0, %v1726_v0  ;;  %1188 = vmatprep.mubr.msk.bf16.mxu0 %vm1727_vm0, %v1726_v0  ;;  %v1399_v6 = vld [vmem:[#allocation7 + $0x8] sm:$0xff]   ;;  %v1400_v7 = vld [vmem:[#allocation8] sm:$0xff]   ;;  %v1402_v9 = vld [vmem:[%s406_s26] sm:$0xff]   ;;  %s2236_s30 = sld [smem:[#allocation23_spill]]  ;;  %vm915_vm3 = vcmask 519168   ;;  %s459_s24 = scalar_lea.vmem [#allocation13], %s1114_s4 }
  0x9c   : > { %1193 = vmatpush3.bf16.msra.mxu1 %v1394_v1  ;;  %1181 = vmatpush3.bf16.msra.mxu0 %v1395_v2  ;;  %v1401_v8 = vld [vmem:[#allocation7] sm:$0xff]   ;;  %v1406_v43 = vld [vmem:[#allocation11 + $0x18] sm:$0xff]   ;;  %v1408_v44 = vld [vmem:[#allocation11 + $0x10] sm:$0xff]   ;;  %s936_s27 = sshll.u32 %s459_s24, 4  ;;  %s2238_s20 = sld [smem:[#allocation34_spill]]  ;;  %s2109_s27 = int_to_ptr.vmem [resolvable:$true] %s936_s27 }
  0x9d   : > { %1194 = vmatprep.subr.bf16.mxu1 %v1726_v0  ;;  %1182 = vmatprep.subr.bf16.mxu0 %v1726_v0  ;;  %v2063_v10 = vld [vmem:[%s2021_s21] sm:$0xff]   ;;  %v1404_v51 = vld [vmem:[#allocation10 + $0x18] sm:$0xff]   ;;  %v1405_v53 = vld [vmem:[#allocation10 + $0x10] sm:$0xff]   ;;  %s919_s19 = scalar_lea.sflag [#allocation4], %s2015_s23  ;;  %s1580_s4 = scalar_lea.vmem %s2109_s27, 128 }
  0x9e   : > { %v1128_v13 = vld [vmem:[%s2176_s5] ss:$0 sm:$0xff]  ;;  %v1407_v54 = vld [vmem:[#allocation10 + $0x8] sm:$0xff]   ;;  %p1581_p5 = scmp.ne.s32.totalorder %s2109_s27, %s1580_s4  ;;  %s1728_s26 = smov [#allocation13]  }
  0x9f   : > { %v1121_v21 = vld [vmem:[%s2174_s3] ss:$0 sm:$0xff]  ;;  %v1410_v56 = vld [vmem:[#allocation11 + $0x8] sm:$0xff]   ;;  %s1584_s16 = sshll.u32 %s1728_s26, 4  ;;  %s1585_s16 = int_to_ptr.vmem [resolvable:$false] %s1584_s16 }
  0xa0   : > { %1195 = vmatpush3.bf16.msra.mxu1 %v1396_v3  ;;  %1183 = vmatpush3.bf16.msra.mxu0 %v1397_v4  ;;  %v1409_v55 = vld [vmem:[#allocation10] sm:$0xff]   ;;  %s1149_s11 = sshll.u32 %s2235_s2, 1  ;;  %p1582_p12 = pnand %p1581_p5, %p1944_p10 }
  0xa1   : > { %1196 = vmatprep.subr.bf16.mxu1 %v1726_v0  ;;  %1184 = vmatprep.subr.bf16.mxu0 %v1726_v0  ;;  %v1411_v57 = vld [vmem:[#allocation11] sm:$0xff]   ;;  %s1150_s7 = sshll.u32 %s2236_s30, 2  ;;  %s1586_s17 = scalar_lea.vmem %s1585_s16, 256 }
  0xa2   : > { %s933_s13 = sadd.s32 %s1150_s7, %s1149_s11  ;;  %p1583_p9 = pneg %p1582_p12 }
  0xa3   : > { %s1151_s6 = sshll.u32 %s933_s13, 6  ;;  %p1587_p8 = scmp.lt.s32.totalorder %s2109_s27, %s1585_s16 }
  0xa4   : > { %1197 = vmatpush3.bf16.msra.mxu1 %v1398_v5  ;;  %1185 = vmatpush3.bf16.msra.mxu0 %v1399_v6  ;;  %s2107_s10 = scalar_lea.hbm %s2238_s20, %s1151_s6  ;;  %p1588_p4 = scmp.lt.s32.totalorder %s1586_s17, %s1580_s4 }
  0xa5   : > { %1198 = vmatprep.subr.bf16.mxu1 %v1726_v0  ;;  %1186 = vmatprep.subr.bf16.mxu0 %v1726_v0 }
  0xa6   : > { %p1589_p1 = por %p1588_p4, %p1587_p8 }
  0xa8   : > { %1199 = vmatpush3.bf16.msra.mxu1 %v1400_v7  ;;  %1187 = vmatpush3.bf16.msra.mxu0 %v1401_v8  ;;  %p1590_p3 = pnand %p1589_p1, %p1583_p9 }
  0xa9   : > { %1210 = vmatprep.subr.bf16.mxu1 %v1726_v0  ;;  %1204 = vmatprep.subr.bf16.mxu0 %v1726_v0 }
  0xab   : > { %1201 = vmatmul.mubr.msk.bf16.vlgmr.msra.gmra.mxu1 %vm512_vm1, %v1402_v9  ;;  %1189 = vmatmul.mubr.msk.bf16.vlgmr.msra.gmra.mxu0 %vm512_vm1, %v2063_v10 }
  0xac   : > { %1211 = vmatpush3.bf16.msra.mxu1 %v1402_v9  ;;  %1206 = vmatprep.mubr.msk.bf16.mxu0 %vm1727_vm0, %v1726_v0 }
  0xad   : > { %1212 = vmatprep.mubr.msk.bf16.mxu1 %vm1727_vm0, %v1726_v0  ;;  %1228 = vmatprep.subr.bf16.mxu1 %v1726_v0 }
 0x16b   : > { %v639_v11 = vpop.f32.mrf.mxu1  ;;  %v550_v12 = vpop.f32.mrf.mxu0 }
 0x16c   : > { %v640_v17 = vadd.f32 %v1128_v13, %v639_v11  ;;  %v551_v24 = vadd.f32 %v1121_v21, %v550_v12 }
 0x16d   : > { %v1202_v14 = vpop.f32.mrf.mxu1  ;;  %v1190_v15 = vpop.f32.mrf.mxu0 }
 0x16f   : > { %v642_v16 = vpop.f32.mrf.mxu1  ;;  %v553_v19 = vpop.f32.mrf.mxu0 }
 0x170   : > { %v643_v18 = vadd.f32 %v1128_v13, %v642_v16  ;;  %v554_v25 = vadd.f32 %v1121_v21, %v553_v19 }
 0x171   : > { %v1203_v20 = vpop.f32.mrf.mxu1  ;;  %v1191_v23 = vpop.f32.mrf.mxu0 }
 0x172   : > { %v646_v22 = vpack.c.bf16 %v643_v18, %v640_v17  ;;  %v557_v26 = vpack.c.bf16 %v554_v25, %v551_v24 }
 0x174   : > { %1205 = vmatpush3.bf16.xpose.msra.mxu0 %v646_v22 }
 0x175   : > { %1216 = vmatprep.subr.bf16.mxu0 %v1726_v0 }
 0x17b   : > { %1207 = vmatmul.mubr.bf16.vlgmr.msra.gmra.mxu0 %v557_v26 }
 0x17c   : > { %1224 = vmatprep.mubr.msk.bf16.mxu0 %vm1727_vm0, %v1726_v0  ;;  %1217 = vmatpush3.bf16.msra.mxu0 %v1406_v43 }
 0x17d   : > { %1218 = vmatprep.subr.bf16.mxu0 %v1726_v0 }
 0x180   : > { %1219 = vmatpush3.bf16.msra.mxu0 %v1408_v44 }
 0x181   : > { %1220 = vmatprep.subr.bf16.mxu0 %v1726_v0 }
 0x184   : > { %1221 = vmatpush3.bf16.msra.mxu0 %v1410_v56 }
 0x185   : > { %1222 = vmatprep.subr.bf16.mxu0 %v1726_v0 }
 0x188   : > { %1223 = vmatpush3.bf16.msra.mxu0 %v1411_v57 }
 0x23b   : > { %v681_v27 = vpop.f32.mrf.mxu0 }
 0x23c   : > { %v689_v28 = vsel %vm688_vm2, %v681_v27, -inf }
 0x23d   : > { %690 = vmax.xlane.f32.xlu0 %v689_v28  ;;  %v1208_v29 = vpop.f32.mrf.mxu0 }
 0x23f   : > { %v684_v30 = vpop.f32.mrf.mxu0 }
 0x240   : > { %v692_v31 = vsel %vm688_vm2, %v684_v30, -inf }
 0x241   : > { %693 = vmax.xlane.f32.xlu0 %v692_v31  ;;  %v1209_v32 = vpop.f32.mrf.mxu0 }
 0x2c6   : > { %v691_v33 = vpop.xlane.xlu0 %690 }
 0x2c7   : > { %v695_v34 = vsub.f32 %v681_v27, %v691_v33 }
 0x2c9   : > { %v697_v35 = vmul.f32 1.442695, %v695_v34 }
 0x2ca   : > { %v694_v36 = vpop.xlane.xlu0 %693 }
 0x2cb   : > { %1412 = vpow2.f32 %v697_v35  ;;  %v696_v37 = vsub.f32 %v684_v30, %v694_v36 }
 0x2cd   : > { %v699_v38 = vmul.f32 1.442695, %v696_v37 }
 0x2cf   : > { %1414 = vpow2.f32 %v699_v38 }
 0x2d8   : > { %v1413_v39 = vpop.eup %1412 }
 0x2d9   : > { %v701_v40 = vsel %vm688_vm2, %v1413_v39, 0.0 }
 0x2da   : > { %702 = vadd.xlane.f32.xlu1 %v701_v40 }
 0x2dc   : > { %v1415_v41 = vpop.eup %1414 }
 0x2dd   : > { %v704_v42 = vsel %vm688_vm2, %v1415_v41, 0.0 }
 0x2de   : > { %705 = vadd.xlane.f32.xlu1 %v704_v42 }
 0x363   : > { %v703_v45 = vpop.xlane.xlu1 %702 }
 0x364   : > { %1416 = vrcp.f32 %v703_v45 }
 0x367   : > { %v706_v46 = vpop.xlane.xlu1 %705 }
 0x368   : > { %1418 = vrcp.f32 %v706_v46 }
 0x371   : > { %v1417_v47 = vpop.eup %1416 }
 0x372   : > { %v709_v50 = vmul.f32 %v1417_v47, %v1413_v39 }
 0x375   : > { %v1419_v48 = vpop.eup %1418 }
 0x376   : > { %v710_v49 = vmul.f32 %v1419_v48, %v1415_v41 }
 0x378   : > { %v711_v52 = vpack.c.bf16 %v710_v49, %v709_v50 }
 0x37a   : > { %1213 = vmatmul.mubr.msk.bf16.vlgmr.msra.gmra.mxu1 %vm688_vm2, %v711_v52 }
 0x37b   : > { %1229 = vmatpush3.bf16.msra.mxu1 %v1404_v51  ;;  %1236 = vmatprep.mubr.msk.bf16.mxu1 %vm1727_vm0, %v1726_v0 }
 0x37c   : > { %1230 = vmatprep.subr.bf16.mxu1 %v1726_v0 }
 0x37f   : > { %1231 = vmatpush3.bf16.msra.mxu1 %v1405_v53 }
 0x380   : > { %1232 = vmatprep.subr.bf16.mxu1 %v1726_v0 }
 0x383   : > { %1233 = vmatpush3.bf16.msra.mxu1 %v1407_v54 }
 0x384   : > { %1234 = vmatprep.subr.bf16.mxu1 %v1726_v0 }
 0x387   : > { %1235 = vmatpush3.bf16.msra.mxu1 %v1409_v55 }
 0x38a   : > { %1237 = vmatmul.mubr.msk.bf16.vlgmr.msra.gmra.mxu1 %vm512_vm1, %v2063_v10 }
 0x43a   : > { %v750_v58 = vpop.f32.mrf.mxu1 }
 0x43c   : > { %v1214_v59 = vpop.f32.mrf.mxu1 }
 0x43e   : > { %v753_v60 = vpop.f32.mrf.mxu1 }
 0x43f   : > { %v765_v61 = vpack.c.bf16 %v753_v60, %v750_v58 }
 0x440   : > { %v1215_v62 = vpop.f32.mrf.mxu1 }
 0x441   : > { %1225 = vmatmul.mubr.msk.bf16.vlgmr.msra.gmra.mxu0 %vm512_vm1, %v765_v61 }
 0x44a   : > { %v900_v63 = vpop.f32.mrf.mxu1 }
 0x44c   : > { %v1238_v1 = vpop.f32.mrf.mxu1 }
 0x44e   : > { %v903_v2 = vpop.f32.mrf.mxu1 }
 0x450   : > { %v1239_v3 = vpop.f32.mrf.mxu1 }
 0x501   : > { %v835_v4 = vpop.f32.mrf.mxu0 }
 0x502   : > { %v901_v0 = vadd.f32 %v900_v63, %v835_v4 }
 0x503   : > { %v1226_v5 = vpop.f32.mrf.mxu0 }
 0x504   : > { %v1154_v6 = vpack.c.bf16 %v901_v0, %v901_v0 }
 0x505   : > { %v838_v7 = vpop.f32.mrf.mxu0 }
 0x506   : > { %916 = vst.msk [vmem:[%s459_s24] sm:$0xf] %vm915_vm3, %v1154_v6  ;;  %v904_v8 = vadd.f32 %v903_v2, %v838_v7 }
 0x507   : > { %v1227_v9 = vpop.f32.mrf.mxu0 }
 0x508   : > { %v1155_v10 = vpack.c.bf16 %v904_v8, %v904_v8 }
 0x50a   : > { %917 = vst.msk [vmem:[%s459_s24 + $0x4] sm:$0xf] %vm915_vm3, %v1155_v10 }
 0x50b   : > { %1593 = shalt.err (!%p1590_p3)
}
 0x50c   : > { %s1594_s12 = scalar_lea.hbm %s2107_s10, 128  ;;  %s1598_s30 = scalar_lea.hbm %s2238_s20, 512 }
 0x50d   : > { %p1595_p6 = scmp.ne.s32.totalorder %s2107_s10, %s1594_s12  ;;  %p1599_p7 = scmp.lt.s32.totalorder %s2107_s10, %s2238_s20 }
 0x50e   : > { %p1600_p13 = scmp.lt.s32.totalorder %s1598_s30, %s1594_s12 }
 0x50f   : > { %p1596_p11 = pnand %p1595_p6, %p1944_p10 }
 0x510   : > { %p1601_p2 = por %p1600_p13, %p1599_p7 }
 0x511   : > { %p1597_p0 = pneg %p1596_p11 }
 0x513   : > { %p1602_p5 = pnand %p1601_p2, %p1597_p0 }
 0x515   : > { %1605 = shalt.err (!%p1602_p5)
}
 0x516   : > { %s1729_s13 = smov 64   ;;  %s1730_s24 = smov 4  }
 0x517   : > { %1260 = dma.vmem_to_hbm [thread:$0]  (%p1944_p10), %s2109_s27, 128, %s2107_s10, %s919_s19, %s1729_s13, %s1729_s13, %s1730_s24  }
 0x518 PF: > { %s2239_s6 = sld [smem:[#allocation20_spill]]  ;;  %p1295_p12 = scmp.ge.s32.totalorder %s1716_s15, 2 }
 0x519   : > { %s2240_s21 = sld [smem:[#allocation29_spill]] }
 0x51e   : > { %s951_s18 = sand.u32 1, %s2239_s6  }
 0x51f   : > { %p2241_p9 = scmp.ne.s32.totalorder %s2240_s21, 0  ;;  %s952_s4 = scalar_lea.sflag [#allocation4], %s951_s18 }
 0x521   : > { %p1283_p8 = pnand %p1295_p12, %p2241_p9 }
 0x523   : > { %p1284_p4 = pneg %p1283_p8 }
 0x525   : > { %1671 = dma.done.wait (%p1284_p4), %s952_s4, 128  }
 0x526   : > { %1673 = vsyncadd (%p1284_p4), %s952_s4, 4294967168  ;;  %s29_s15 = sadd.s32 1, %s1716_s15   ;;  %s2242_s23 = sld [smem:[#allocation21_spill]] }
 0x527   : > { %p26_p1 = scmp.ge.s32.totalorder %s29_s15, 6   ;;  %s2243_s10 = sld [smem:[#allocation28_spill]] }
 0x528   : > { %s2244_s11 = sld [smem:[#allocation24_spill]]  ;;  %s2247_s27 = smov %s1680_s28 }
 0x529   : > { %s2245_s13 = sld [smem:[#allocation25_spill]]  ;;  %s2248_s28 = smov %s1684_s29 }
 0x52a   : > { %s2246_s22 = sld [smem:[#allocation26_spill]]  ;;  %s2249_s29 = smov %s1990_s25 }
 0x52b   : > { %s2250_s30 = smov %s1692_s9  ;;  %s2252_s12 = smov %s1712_s14 }
 0x52c   : > { %s2251_s9 = smov %s2242_s23  ;;  %28 = sbr.rel (!%p26_p1) target bundleno = 19 (0x13), region = 126 }
 0x530   : > { %s2253_s14 = smov %s2246_s22 }
 0x531   :  { %957 = vsyncpa [#allocation3], 1 }
 0x532   :  { %959 = vsyncpa [#allocation3 + $0x1], 1 }
 0x533   :  { %960 = vsyncpa [#allocation6], 1 }
 0x534   :  { %962 = vsyncpa [#allocation6 + $0x1], 1 }
 0x535   :  { %963 = vsyncpa [#allocation9], 1 }
 0x536   :  { %964 = vsyncpa [#allocation12], 1 }
 0x537   :  { %965 = vsyncpa [#allocation4], 1 }
 0x538   :  { %967 = vsyncpa [#allocation4 + $0x1], 1 }

</bundles_post_ra>
